<compile_context>
chip_gen: v5e
topology: v5e:2x2
jax: 0.10.0
libtpu: 0.0.40
codegen_flags: <defaults>
</compile_context>

<pallas_src>
import functools

import numpy as np
import jax
import jax.numpy as jnp
from jax.experimental import pallas as pl
from jax.experimental.pallas import tpu as pltpu

THRESHOLD = 0.18


def _get_mask_kernel(pat_ref, sigma_ref, mask_ref, vmask_ref, hsum_ref, *,
                     threshold_sum, w):
    # pat_ref:   (2, Np) f32        row 0 = checkerboard, row 1 = sparse pool pattern
    # sigma_ref: (b_blk, c_blk, Np) streamed channel tile
    # mask_ref:  (b_blk, 1, Np) f32
    # vmask_ref: (b_blk, 1, Np) f32
    # hsum_ref:  (b_blk, 1, Np) f32 channel-sum accumulator (persists over k)
    k = pl.program_id(1)

    @pl.when(k == 0)
    def _():
        hsum_ref[...] = jnp.zeros_like(hsum_ref)

    # Stream one channel tile per grid step; accumulate the channel sum in f32
    # (no whole-tile upcast even for bf16 inputs).
    hsum_ref[...] += jnp.sum(sigma_ref[...], axis=1, keepdims=True,
                             dtype=jnp.float32)

    @pl.when(k == pl.num_programs(1) - 1)
    def _():
        hsum = hsum_ref[...]                      # (b_blk, 1, Np)
        checker = pat_ref[0:1, :]                 # (1, Np), broadcasts over batch
        mask2 = pat_ref[1:2, :]                   # (1, Np)

        # pool(i, j) = (channel-mean <= thr) on the sparse odd-parity pattern;
        # 1/C is folded into threshold_sum = thr * C.
        pool = jnp.where((hsum <= threshold_sum) & (mask2 > 0.5), 1.0, 0.0)
        pool = pool.astype(jnp.float32)           # (b_blk, 1, Np)

        b_blk, _, n = pool.shape
        zw = jnp.zeros((b_blk, 1, w), jnp.float32)
        z1 = jnp.zeros((b_blk, 1, 1), jnp.float32)
        # Flat shifts by +-W (row shifts) and +-1 (column shifts), zero-filled.
        # Row-wrapped contributions of the +-1 shifts only ever hit cells whose
        # checkerboard value is already 0 (parity), so they cannot change the
        # result; clamped torch scatters are no-ops for the same reason.  Padded
        # lanes hold pool = 0 and are sliced off by the wrapper.
        pool_ip1 = jnp.concatenate([pool[..., w:], zw], axis=-1)      # pool(i+1, j)
        pool_im1 = jnp.concatenate([zw, pool[..., :n - w]], axis=-1)  # pool(i-1, j)
        pool_jm1 = jnp.concatenate([z1, pool[..., :n - 1]], axis=-1)  # pool(i, j-1)
        pool_jp1 = jnp.concatenate([pool[..., 1:], z1], axis=-1)      # pool(i, j+1)

        kill = (pool_ip1 + pool_im1 + pool_jm1) > 0.0
        mask = jnp.where((checker > 0.5) & jnp.logical_not(kill), 1.0, 0.0)

        mask_ref[...] = mask.astype(mask_ref.dtype)       # mask
        vmask_ref[...] = pool_jp1.astype(vmask_ref.dtype)  # values_mask


def _vmem_capacity_bytes(default_bytes=64 * 1024 * 1024):
    """Physical VMEM of the local TPU; conservative (v7x-sized) fallback."""
    try:
        info = pltpu.get_tpu_info()
        cap = getattr(info, "vmem_capacity_bytes", None)
        if cap is not None and int(cap) > 0:
            return int(cap)
    except Exception:
        pass
    return default_bytes


def _pick_blocks(B, C, Np, itemsize, budget_bytes):
    """Largest (b_blk, c_blk) blocks fitting the VMEM budget.

    b_blk is capped at B//2 (for B >= 2) so the parallel grid axis has >= 2 steps
    (both v7x TensorCores get work).  c_blk is the sublane axis of the streamed
    sigma tile, so it is either the full C or a multiple of the dtype's
    sublane-pack granularity (8 for f32, 16 for bf16, 32 for int8/fp8).
    """
    b_cap = max(1, B // 2) if B >= 2 else 1
    b_cands = [d for d in range(b_cap, 0, -1) if B % d == 0]

    c_gran = max(8, 32 // itemsize)
    c_cands = [C] + [d for d in range((C // c_gran) * c_gran, 0, -c_gran)
                     if d != C and C % d == 0]

    for b_blk in b_cands:
        for c_blk in c_cands:
            vmem = (2 * b_blk * c_blk * Np * itemsize   # sigma tile, double-buffered
                    + 2 * 2 * b_blk * Np * 4            # two f32 outputs, double-buffered
                    + b_blk * Np * 4                    # f32 channel-sum scratch
                    + 2 * 2 * Np * 4)                   # pattern tile
            if vmem <= budget_bytes:
                return b_blk, c_blk
    return 1, c_cands[-1]


def get_mask_pallas(sigma, threshold=THRESHOLD):
    B, C, H, W = sigma.shape
    assert H >= 2 and W >= 2, "GetMask kernel assumes H >= 2 and W >= 2"
    N = H * W
    Np = ((N + 127) // 128) * 128          # lane-dense plane (multiple of 128)

    # Lane-dense view: flatten the spatial plane onto the lane axis (free reshape).
    sigma_flat = sigma.reshape(B, C, N)

    # Static patterns, computed once outside the kernel and flattened to (2, N).
    ii = jnp.arange(H, dtype=jnp.int32)[:, None]
    jj = jnp.arange(W, dtype=jnp.int32)[None, :]
    checker = ((ii + jj) % 2) == 0
    mask2 = (((ii % 4) == 0) & ((jj % 4) == 1)) | (((ii % 4) == 2) & ((jj % 4) == 3))
    patterns = jnp.stack([checker, mask2]).astype(jnp.float32).reshape(2, N)

    if Np != N:
        # Padded lanes carry checker = mask2 = 0 -> zero outputs, no epilogue
        # contribution; sliced off below.
        sigma_flat = jnp.pad(sigma_flat, ((0, 0), (0, 0), (0, Np - N)))
        patterns = jnp.pad(patterns, ((0, 0), (0, Np - N)))

    itemsize = sigma.dtype.itemsize
    vmem_cap = _vmem_capacity_bytes()
    if vmem_cap >= 96 * 1024 * 1024:       # v5e / v6e: 128 MiB physical VMEM
        pick_budget, vmem_limit = 96 * 1024 * 1024, 112 * 1024 * 1024
    else:                                  # v7x (64 MiB) or unknown: stay conservative
        pick_budget, vmem_limit = 40 * 1024 * 1024, 52 * 1024 * 1024

    b_blk, c_blk = _pick_blocks(B, C, Np, itemsize, pick_budget)
    grid = (B // b_blk, C // c_blk)
    # TODO(synk): for B == 1 the parallel axis has a single step; a C- or N-split
    # with a tiny combine epilogue would be needed to occupy both v7x TensorCores.

    kernel = functools.partial(_get_mask_kernel,
                               threshold_sum=float(threshold) * C, w=W)

    cost = pl.CostEstimate(
        flops=int(B * C * Np + 10 * B * Np),
        transcendentals=0,
        bytes_accessed=int(B * C * Np * itemsize + 2 * B * Np * 4 + 2 * Np * 4),
    )

    mask_flat, vmask_flat = pl.pallas_call(
        kernel,
        out_shape=(jax.ShapeDtypeStruct((B, 1, Np), jnp.float32),
                   jax.ShapeDtypeStruct((B, 1, Np), jnp.float32)),
        grid_spec=pltpu.PrefetchScalarGridSpec(
            num_scalar_prefetch=0,
            grid=grid,
            in_specs=[
                pl.BlockSpec((2, Np), lambda b, k: (0, 0)),                # patterns (resident)
                pl.BlockSpec((b_blk, c_blk, Np), lambda b, k: (b, k, 0)),  # sigma stream
            ],
            out_specs=[
                pl.BlockSpec((b_blk, 1, Np), lambda b, k: (b, 0, 0)),      # mask
                pl.BlockSpec((b_blk, 1, Np), lambda b, k: (b, 0, 0)),      # values_mask
            ],
            scratch_shapes=[pltpu.VMEM((b_blk, 1, Np), jnp.float32)],
        ),
        compiler_params=pltpu.CompilerParams(
            dimension_semantics=("parallel", "arbitrary"),
            vmem_limit_bytes=vmem_limit,
        ),
        cost_estimate=cost,
    )(patterns, sigma_flat)

    if Np != N:
        mask_flat = mask_flat[..., :N]
        vmask_flat = vmask_flat[..., :N]
    mask = mask_flat.reshape(B, 1, H, W)
    values_mask = vmask_flat.reshape(B, 1, H, W)
    return mask, values_mask


def _reference_numpy(sigma, threshold=THRESHOLD):
    """Direct numpy transcription of the PyTorch GetMask.forward (scatter-based)."""
    h = sigma.astype(np.float32).mean(axis=1, keepdims=True)
    B, C, H, W = h.shape
    mask = np.zeros((B, C, H, W), np.float32)
    mask[..., 0::2, 0::2] = 1
    mask[..., 1::2, 1::2] = 1
    values_mask = np.zeros_like(mask)
    pool_pos = h <= threshold
    pool_pos[..., 0::2, 0::2] = False
    pool_pos[..., 1::2, 1::2] = False
    mask2 = np.zeros((B, C, H, W), np.float32)
    mask2[..., 0::4, 1::4] = 1
    mask2[..., 2::4, 3::4] = 1
    pool_pos = pool_pos * mask2
    pos = np.argwhere(pool_pos)
    b, c, i, j = pos[:, 0], pos[:, 1], pos[:, 2], pos[:, 3]
    bi = np.clip(i - 1, 0, H - 1)
    ti = np.clip(i + 1, 0, H - 1)
    rj = np.clip(j + 1, 0, W - 1)
    lj = np.clip(j - 1, 0, W - 1)
    mask[b, c, bi, j] = 0
    mask[b, c, ti, j] = 0
    mask[b, c, i, rj] = 0
    values_mask[b, c, i, lj] = 1
    return mask, values_mask


if __name__ == "__main__":
    key = jax.random.PRNGKey(0)
    B, C, H, W = 2, 4, 16, 16
    # Quantize sigma to multiples of 0.25 so the channel sum is exact in f32 and
    # never sits within ULPs of the 0.18 threshold -> the bit-exact comparison
    # against numpy is robust to reduction-order differences.
    sigma = jnp.round(jax.random.normal(key, (B, C, H, W), dtype=jnp.float32) * 4.0) / 4.0

    mask, values_mask = get_mask_pallas(sigma)
    jax.block_until_ready((mask, values_mask))

    ref_mask, ref_vmask = _reference_numpy(np.asarray(sigma))
    np.testing.assert_array_equal(np.asarray(mask), ref_mask)
    np.testing.assert_array_equal(np.asarray(values_mask), ref_vmask)

    print("KERNEL_OK")
</pallas_src>

<mosaic_0001>
module attributes {stable_mosaic.version = 11 : i64} {
  func.func @_get_mask_kernel(%arg0: i32, %arg1: i32, %arg2: memref<2x256xf32, #tpu.memory_space<vmem>>, %arg3: memref<1x4x256xf32, #tpu.memory_space<vmem>>, %arg4: memref<1x1x256xf32, #tpu.memory_space<vmem>>, %arg5: memref<1x1x256xf32, #tpu.memory_space<vmem>>, %arg6: memref<1x1x256xf32, #tpu.memory_space<vmem>>) attributes {dimension_semantics = [#tpu.dimension_semantics<parallel>, #tpu.dimension_semantics<arbitrary>], iteration_bounds = array<i64: 2, 1>, scalar_prefetch = 0 : i64, scratch_operands = 1 : i64, tpu.core_type = #tpu.core_type<tc>, window_params = [{pipeline_mode = #tpu.pipeline_mode<synchronous>, transform_indices = @transform_0, window_bounds = array<i64: 2, 256>}, {transform_indices = @transform_1, window_bounds = array<i64: 1, 4, 256>}, {transform_indices = @transform_2, window_bounds = array<i64: 1, 1, 256>}, {transform_indices = @transform_3, window_bounds = array<i64: 1, 1, 256>}]} {
    %c0_i32 = arith.constant 0 : i32
    %0 = arith.cmpi eq, %arg1, %c0_i32 : i32
    %1 = arith.extui %0 : i1 to i32
    %c0_i32_0 = arith.constant 0 : i32
    %2 = arith.cmpi ne, %1, %c0_i32_0 : i32
    scf.if %2 {
      %cst_11 = arith.constant 0.000000e+00 : f32
      %12 = vector.broadcast %cst_11 : f32 to vector<1x1x256xf32>
      %c0_12 = arith.constant 0 : index
      %c0_13 = arith.constant 0 : index
      %c0_14 = arith.constant 0 : index
      %13 = vector.load %arg6[%c0_12, %c0_13, %c0_14] : memref<1x1x256xf32, #tpu.memory_space<vmem>>, vector<1x1x256xf32>
      tpu.vector_store %arg6[%c0_12, %c0_13, %c0_14], %12 {strides = array<i32>} : memref<1x1x256xf32, #tpu.memory_space<vmem>>, vector<1x1x256xf32>,
    } else {
    }
    %c0 = arith.constant 0 : index
    %c0_1 = arith.constant 0 : index
    %c0_2 = arith.constant 0 : index
    %3 = vector.load %arg6[%c0, %c0_1, %c0_2] : memref<1x1x256xf32, #tpu.memory_space<vmem>>, vector<1x1x256xf32>
    %c0_3 = arith.constant 0 : index
    %c0_4 = arith.constant 0 : index
    %c0_5 = arith.constant 0 : index
    %4 = vector.load %arg3[%c0_3, %c0_4, %c0_5] : memref<1x4x256xf32, #tpu.memory_space<vmem>>, vector<1x4x256xf32>
    %cst = arith.constant dense<0.000000e+00> : vector<1x256xf32>
    %5 = vector.multi_reduction <add>, %4, %cst [1] : vector<1x4x256xf32> to vector<1x256xf32>
    %6 = vector.shape_cast %5 : vector<1x256xf32> to vector<1x1x256xf32>
    %7 = arith.addf %3, %6 : vector<1x1x256xf32>
    %c0_6 = arith.constant 0 : index
    %c0_7 = arith.constant 0 : index
    %c0_8 = arith.constant 0 : index
    %8 = vector.load %arg6[%c0_6, %c0_7, %c0_8] : memref<1x1x256xf32, #tpu.memory_space<vmem>>, vector<1x1x256xf32>
    tpu.vector_store %arg6[%c0_6, %c0_7, %c0_8], %7 {strides = array<i32>} : memref<1x1x256xf32, #tpu.memory_space<vmem>>, vector<1x1x256xf32>,
    %c0_i32_9 = arith.constant 0 : i32
    %9 = arith.cmpi eq, %arg1, %c0_i32_9 : i32
    %10 = arith.extui %9 : i1 to i32
    %c0_i32_10 = arith.constant 0 : i32
    %11 = arith.cmpi ne, %10, %c0_i32_10 : i32
    scf.if %11 {
      %c0_11 = arith.constant 0 : index
      %c0_12 = arith.constant 0 : index
      %c0_13 = arith.constant 0 : index
      %12 = vector.load %arg6[%c0_11, %c0_12, %c0_13] : memref<1x1x256xf32, #tpu.memory_space<vmem>>, vector<1x1x256xf32>
      %c0_14 = arith.constant 0 : index
      %c0_15 = arith.constant 0 : index
      %13 = vector.load %arg2[%c0_14, %c0_15] : memref<2x256xf32, #tpu.memory_space<vmem>>, vector<1x256xf32>
      %c1 = arith.constant 1 : index
      %c0_16 = arith.constant 0 : index
      %14 = vector.load %arg2[%c1, %c0_16] : memref<2x256xf32, #tpu.memory_space<vmem>>, vector<1x256xf32>
      %cst_17 = arith.constant 7.200000e-01 : f32
      %15 = vector.broadcast %cst_17 : f32 to vector<1x1x256xf32>
      %16 = arith.cmpf ole, %12, %15 : vector<1x1x256xf32>
      %cst_18 = arith.constant 5.000000e-01 : f32
      %17 = vector.broadcast %cst_18 : f32 to vector<1x256xf32>
      %18 = arith.cmpf ogt, %14, %17 : vector<1x256xf32>
      %19 = vector.shape_cast %18 : vector<1x256xi1> to vector<1x1x256xi1>
      %20 = arith.andi %16, %19 : vector<1x1x256xi1>
      %cst_19 = arith.constant 1.000000e+00 : f32
      %cst_20 = arith.constant 0.000000e+00 : f32
      %21 = vector.broadcast %cst_19 : f32 to vector<1x1x256xf32>
      %22 = vector.broadcast %cst_20 : f32 to vector<1x1x256xf32>
      %23 = arith.select %20, %21, %22 : vector<1x1x256xi1>, vector<1x1x256xf32>
      %cst_21 = arith.constant 0.000000e+00 : f32
      %24 = vector.broadcast %cst_21 : f32 to vector<1x1x16xf32>
      %cst_22 = arith.constant 0.000000e+00 : f32
      %25 = vector.broadcast %cst_22 : f32 to vector<1x1x1xf32>
      %26 = vector.extract_strided_slice %23 {offsets = [0, 0, 16], sizes = [1, 1, 240], strides = [1, 1, 1]} : vector<1x1x256xf32> to vector<1x1x240xf32>
      %27 = tpu.concatenate %26, %24 in 2 : vector<1x1x240xf32>, vector<1x1x16xf32> -> vector<1x1x256xf32>
      %28 = vector.extract_strided_slice %23 {offsets = [0, 0, 0], sizes = [1, 1, 240], strides = [1, 1, 1]} : vector<1x1x256xf32> to vector<1x1x240xf32>
      %29 = tpu.concatenate %24, %28 in 2 : vector<1x1x16xf32>, vector<1x1x240xf32> -> vector<1x1x256xf32>
      %30 = vector.extract_strided_slice %23 {offsets = [0, 0, 0], sizes = [1, 1, 255], strides = [1, 1, 1]} : vector<1x1x256xf32> to vector<1x1x255xf32>
      %31 = tpu.concatenate %25, %30 in 2 : vector<1x1x1xf32>, vector<1x1x255xf32> -> vector<1x1x256xf32>
      %32 = vector.extract_strided_slice %23 {offsets = [0, 0, 1], sizes = [1, 1, 255], strides = [1, 1, 1]} : vector<1x1x256xf32> to vector<1x1x255xf32>
      %33 = tpu.concatenate %32, %25 in 2 : vector<1x1x255xf32>, vector<1x1x1xf32> -> vector<1x1x256xf32>
      %34 = arith.addf %27, %29 : vector<1x1x256xf32>
      %35 = arith.addf %34, %31 : vector<1x1x256xf32>
      %cst_23 = arith.constant 0.000000e+00 : f32
      %36 = vector.broadcast %cst_23 : f32 to vector<1x1x256xf32>
      %37 = arith.cmpf ogt, %35, %36 : vector<1x1x256xf32>
      %cst_24 = arith.constant 5.000000e-01 : f32
      %38 = vector.broadcast %cst_24 : f32 to vector<1x256xf32>
      %39 = arith.cmpf ogt, %13, %38 : vector<1x256xf32>
      %cst_25 = arith.constant dense<true> : vector<1x1x256xi1>
      %40 = arith.xori %37, %cst_25 : vector<1x1x256xi1>
      %41 = vector.shape_cast %39 : vector<1x256xi1> to vector<1x1x256xi1>
      %42 = arith.andi %41, %40 : vector<1x1x256xi1>
      %cst_26 = arith.constant 1.000000e+00 : f32
      %cst_27 = arith.constant 0.000000e+00 : f32
      %43 = vector.broadcast %cst_26 : f32 to vector<1x1x256xf32>
      %44 = vector.broadcast %cst_27 : f32 to vector<1x1x256xf32>
      %45 = arith.select %42, %43, %44 : vector<1x1x256xi1>, vector<1x1x256xf32>
      %c0_28 = arith.constant 0 : index
      %c0_29 = arith.constant 0 : index
      %c0_30 = arith.constant 0 : index
      %46 = vector.load %arg4[%c0_28, %c0_29, %c0_30] : memref<1x1x256xf32, #tpu.memory_space<vmem>>, vector<1x1x256xf32>
      tpu.vector_store %arg4[%c0_28, %c0_29, %c0_30], %45 {strides = array<i32>} : memref<1x1x256xf32, #tpu.memory_space<vmem>>, vector<1x1x256xf32>,
      %c0_31 = arith.constant 0 : index
      %c0_32 = arith.constant 0 : index
      %c0_33 = arith.constant 0 : index
      %47 = vector.load %arg5[%c0_31, %c0_32, %c0_33] : memref<1x1x256xf32, #tpu.memory_space<vmem>>, vector<1x1x256xf32>
      tpu.vector_store %arg5[%c0_31, %c0_32, %c0_33], %33 {strides = array<i32>} : memref<1x1x256xf32, #tpu.memory_space<vmem>>, vector<1x1x256xf32>,
    } else {
    }
    return
  }
  func.func @transform_0(%arg0: i32, %arg1: i32) -> (i32, i32) {
    %c0_i32 = arith.constant 0 : i32
    %c0_i32_0 = arith.constant 0 : i32
    %c0_i32_1 = arith.constant 0 : i32
    return %c0_i32, %c0_i32_0 : i32, i32
  }
  func.func @transform_1(%arg0: i32, %arg1: i32) -> (i32, i32, i32) {
    %c0_i32 = arith.constant 0 : i32
    %c0_i32_0 = arith.constant 0 : i32
    return %arg0, %arg1, %c0_i32 : i32, i32, i32
  }
  func.func @transform_2(%arg0: i32, %arg1: i32) -> (i32, i32, i32) {
    %c0_i32 = arith.constant 0 : i32
    %c0_i32_0 = arith.constant 0 : i32
    %c0_i32_1 = arith.constant 0 : i32
    return %arg0, %c0_i32, %c0_i32_0 : i32, i32, i32
  }
  func.func @transform_3(%arg0: i32, %arg1: i32) -> (i32, i32, i32) {
    %c0_i32 = arith.constant 0 : i32
    %c0_i32_0 = arith.constant 0 : i32
    %c0_i32_1 = arith.constant 0 : i32
    return %arg0, %c0_i32, %c0_i32_0 : i32, i32, i32
  }
}

</mosaic_0001>

<bundles_post_ra>
// kernel: tpu_custom_call.1
= control target key start
LH: loop header
LB: loop body
LE: loop exit
PB: predicated region body
PF: predicated region fallthrough
CT: control target
= control target key end

     0   :  { %9 = vsyncpa [#allocation4], 0  ;;  %s1036_s0 = inlined_call_operand.hbm [shape: f32[2,256], index: 0, kind: input, shape index: {}]   ;;  %s1037_s1 = inlined_call_operand.hbm [shape: f32[2,4,256], index: 1, kind: input, shape index: {}]   ;;  %s1038_s2 = inlined_call_operand.hbm [shape: f32[2,1,256], index: 2, kind: output, shape index: {0}]   ;;  %s1039_s3 = inlined_call_operand.hbm [shape: f32[2,1,256], index: 3, kind: output, shape index: {1}]  }
   0x1   :  { %10 = vsyncpa [#allocation7], 0 }
   0x2   :  { %12 = vsyncpa [#allocation7 + $0x1], 0 }
   0x3   :  { %13 = vsyncpa [#allocation5], 0 }
   0x4   :  { %15 = vsyncpa [#allocation5 + $0x1], 0 }
   0x5   :  { %16 = vsyncpa [#allocation10], 0 }
   0x6   :  { %18 = vsyncpa [#allocation10 + $0x1], 0  ;;  %s840_s12 = smov 0   ;;  %s842_s13 = smov 0  }
   0x7   :  { %s844_s14 = smov 0   ;;  %s846_s15 = smov 0  }
   0x8   :  { %s848_s16 = smov 0   ;;  %s850_s17 = smov 0  }
   0x9 LB: > { %s507_s18 = sadd.s32 4294967295, %s810_s17   ;;  %s508_s19 = sadd.s32 4294967294, %s810_s17   ;;  %s810_s17 = sphi %s850_s17, %s24_s17   ;;  %s806_s16 = sphi %s848_s16, %s1053_s16   ;;  %s802_s15 = sphi %s846_s15, %s1052_s15   ;;  %s798_s14 = sphi %s844_s14, %s1051_s14   ;;  %s794_s13 = sphi %s842_s13, %s1050_s13   ;;  %s790_s12 = sphi %s840_s12, %s1049_s12  }
   0xa   : > { %p79_p0 = scmp.ne.s32.totalorder %s794_s13, %s790_s12  ;;  %p874_p1 = scmp.eq.s32.totalorder %s507_s18, 0 }
   0xb   : > { %p878_p2 = scmp.eq.s32.totalorder %s507_s18, 1  ;;  %p109_p3 = scmp.eq.s32.totalorder %s508_s19, 1 }
   0xc   : > { %p884_p4 = por %p874_p1, %p79_p0  ;;  %p509_p5 = scmp.ge.s32.totalorder %s810_s17, 1 }
   0xd   : > { %p889_p6 = por %p109_p3, %p79_p0  ;;  %p142_p7 = scmp.lt.s32.totalorder %s810_s17, 3 }
   0xe   : > { %s154_s26 = sshll.u32 %s1036_s0, 4  ;;  %p511_p9 = scmp.ge.s32.totalorder %s810_s17, 2  ;;  %s155_s26 = int_to_ptr.hbm [resolvable:$true] %s154_s26 }
   0xf   : > { %p897_p8 = pnand %p509_p5, %p142_p7  ;;  %s812_s28 = smov [#allocation3]  }
  0x10   : > { %s156_s29 = sshll.u32 %s812_s28, 4  ;;  %s36_s30 = sadd.s32 1, %s806_s16  ;;  %s157_s29 = int_to_ptr.vmem [resolvable:$true] %s156_s29 }
  0x11   : > { %p537_p10 = pneg %p897_p8  ;;  %p38_p12 = scmp.ge.s32.totalorder %s36_s30, 2 }
  0x12   : > { %s66_s4 = sadd.s32 1, %s798_s14  ;;  %p73_p13 = scmp.ne.s32.totalorder %s798_s14, %s794_s13 }
  0x13   : > { %p538_p11 = pnand %p537_p10, %p874_p1  ;;  %p74_p0 = scmp.eq.s32.totalorder %s810_s17, 0 }
  0x14   : > { %s1055_s30 = smov (%p38_p12, %s36_s30), 0  ;;  %p919_p5 = por %p878_p2, %p73_p13 }
  0x15   : > { %540 = dma.hbm_to_vmem [thread:$0]  (!%p538_p11), %s155_s26, 64, %s157_s29, [#allocation4]  }
  0x16   : > { %p913_p3 = por %p74_p0, %p73_p13  ;;  %s61_s7 = ssub.s32 %s806_s16, %s1055_s30 }
  0x17   : > { %p553_p7 = scmp.lt.s32.totalorder %s810_s17, 2  ;;  %p64_p10 = scmp.eq.s32.totalorder %s61_s7, 0 }
  0x18   : > { %s167_s8 = sand.u32 1, %s798_s14   ;;  %s526_s11 = sshll.u32 %s806_s16, 3 }
  0x19   : > { %s512_s9 = sshll.u32 %s167_s8, 3  ;;  %s178_s24 = scalar_lea.hbm %s1037_s1, %s526_s11 }
  0x1a   : > { %s928_s10 = scalar_select %p64_p10, %s798_s14, %s66_s4  }
  0x1b   : > { %s171_s25 = scalar_lea.vmem [#allocation6], %s512_s9  ;;  %s180_s21 = sshll.u32 %s178_s24, 4  ;;  %s181_s21 = int_to_ptr.hbm [resolvable:$true] %s180_s21 }
  0x1c   : > { %s182_s26 = sshll.u32 %s171_s25, 4  ;;  %p542_p2 = pnand %p553_p7, %p913_p3  ;;  %s183_s26 = int_to_ptr.vmem [resolvable:$true] %s182_s26 }
  0x1d   : > { %s168_s28 = scalar_lea.sflag [#allocation7], %s167_s8  ;;  %191 = sbr.rel (%p897_p8) target bundleno = 228 (0xe4), region = 28 }
  0x1e   : > { %544 = dma.hbm_to_vmem [thread:$0]  (!%p542_p2), %s181_s21, 128, %s183_s26, %s168_s28  }
  0x22   : > { %773 = dma.done.wait (%p874_p1), [#allocation4], 64  }
  0x23   : > { %775 = vsyncadd (%p874_p1), [#allocation4], 4294967232  ;;  %s943_s29 = sand.u32 1, %s794_s13  }
  0x24   : > { %s517_s4 = sshll.u32 %s943_s29, 3  ;;  %s199_s5 = scalar_lea.sflag [#allocation7], %s943_s29 }
  0x25   : > { %s202_s7 = scalar_lea.vmem [#allocation6], %s517_s4 }
  0x26   : > { %777 = dma.done.wait (%p884_p4), %s199_s5, 128  }
  0x27   : > { %779 = vsyncadd (%p884_p4), %s199_s5, 4294967168  ;;  %v235_v0 = vlaneseq  ;;  %v813_v2 = vmov 0.0   ;;  %v241_v3 = vld [vmem:[%s202_s7] sm:$0xff]  ;;  %vm248_vm1 = vcmask 1043456   ;;  %vm266_vm2 = vcmask 1040384   ;;  %s814_s20 = smov 112  }
  0x28   : > { %243 = vst [vmem:[#allocation1] ss:$2 sm:$0xff] %v241_v3  ;;  %v281_v24 = vld [vmem:[#allocation3 + $0x1] ss:$2 sm:$0x3]  ;;  %s815_s22 = smov 1  }
  0x29   : > { %vm951_vm0 = vcmp.lt.s32.totalorder %v235_v0, 256  ;;  %vm283_vm3 = vcmp.gt.f32.partialorder %v281_v24, 0.5  ;;  %s816_s27 = smov 16   ;;  %s817_s8 = smov 127   ;;  %vm293_vm6 = vcmask 916480   ;;  %vm311_vm7 = vcmask 7168  }
  0x2a   : > { %239 = vst.msk [vmem:[#allocation2] sm:$0x3] %vm951_vm0, %v813_v2  ;;  %s518_s9 = sshll.u32 %s943_s29, 1  ;;  %s522_s11 = sshll.u32 %s802_s15, 1  ;;  %vm302_vm8 = vcmask 130048   ;;  %vm320_vm9 = vcmask 1039360  }
  0x2b   : > { %s376_s24 = scalar_lea.hbm %s1039_s3, %s522_s11  ;;  %s230_s25 = scalar_lea.vmem [#allocation9], %s518_s9 }
  0x2c   : > { %s378_s26 = sshll.u32 %s230_s25, 4  ;;  %s380_s21 = sshll.u32 %s376_s24, 4  ;;  %s379_s26 = int_to_ptr.vmem [resolvable:$true] %s378_s26  ;;  %s381_s21 = int_to_ptr.hbm [resolvable:$true] %s380_s21 }
  0x2d   : > { %s352_s28 = scalar_lea.sflag [#allocation10], %s943_s29  ;;  %s706_s4 = sshra.s32 %s381_s21, 4  ;;  %s707_s4 = int_to_ptr.hbm [resolvable:$true] %s706_s4 }
  0x2e   : > { %s708_s5 = scalar_lea.hbm %s707_s4, 2  ;;  %p713_p11 = scmp.lt.s32.totalorder %s707_s4, %s1039_s3 }
  0x2f   : > { %v244_v4 = vld.sshfl [vmem:[#allocation1] sm:$0xff pattern:$0x75316420]  ;;  %v245_v5 = vld.sshfl [vmem:[#allocation1 + $0x8] sm:$0xff pattern:$0x75316420]  ;;  %p709_p1 = scmp.ne.s32.totalorder %s707_s4, %s708_s5 }
  0x30   : > { %v249_v6 = vsel %vm248_vm1, %v244_v4, 0.0  ;;  %v256_v7 = vsel %vm248_vm1, %v245_v5, 0.0 }
  0x31   : > { %v250_v8 = vrot.slane %v249_v6, 4  ;;  %v257_v9 = vrot.slane %v256_v7, 4  ;;  %v240_v20 = vld [vmem:[#allocation2] sm:$0x3]  ;;  %p710_p4 = pnand %p709_p1, %p919_p5 }
  0x33   : > { %v251_v10 = vadd.f32 %v250_v8, %v249_v6  ;;  %v258_v11 = vadd.f32 %v257_v9, %v256_v7  ;;  %p711_p8 = pneg %p710_p4 }
  0x35   : > { %v252_v12 = vrot.slane %v251_v10, 2  ;;  %v259_v13 = vrot.slane %v258_v11, 2 }
  0x37   : > { %v253_v14 = vadd.f32 %v252_v12, %v251_v10  ;;  %v260_v15 = vadd.f32 %v259_v13, %v258_v11 }
  0x39   : > { %v254_v16 = vrot.slane %v253_v14, 1  ;;  %v261_v17 = vrot.slane %v260_v15, 1 }
  0x3b   : > { %v255_v18 = vadd.f32 %v254_v16, %v253_v14  ;;  %v262_v19 = vadd.f32 %v261_v17, %v260_v15 }
  0x3d   : > { %v265_v21 = vrot.slane %v262_v19, 7 }
  0x3f   : > { %v267_v22 = vsel %vm266_vm2, %v255_v18, %v265_v21 }
  0x40   : > { %v269_v23 = vadd.f32 %v267_v22, %v240_v20 }
  0x42   : > { %274 = vst.msk [vmem:[#allocation2] sm:$0x3] %vm951_vm0, %v269_v23 }
  0x49   : > { %v278_v25 = vld [vmem:[#allocation2] sm:$0x3] }
  0x4a   : > { %vm282_vm4 = vcmp.le.f32.partialorder %v278_v25, 0.72 }
  0x4b   : > { %vm284_vm5 = vmand %vm282_vm4, %vm283_vm3 }
  0x4c   : > { %v285_v26 = vsel %vm284_vm5, 1.0, %v813_v2 }
  0x4d   : > { %v287_v27 = vperm.slane %v285_v26, 0  ;;  %v288_v28 = vperm.slane %v285_v26, 1 }
  0x4f   : > { %v612_v29 = vpack.i.bf16 %v287_v27, %v288_v28  ;;  %v622_v30 = vpack.i.bf16 %v288_v28, %v287_v27 }
  0x51   : > { %613 = vrot.lane.b32.xlu0 %v612_v29, %s814_s20  ;;  %623 = vrot.lane.b32.xlu1 %v622_v30, %s815_s22  ;;  %s712_s22 = scalar_lea.hbm %s1039_s3, 4 }
  0x52   : > { %p714_p12 = scmp.lt.s32.totalorder %s712_s22, %s708_s5 }
  0x54   : > { %p715_p13 = por %p714_p12, %p713_p11 }
  0x56   : > { %p716_p0 = pnand %p715_p13, %p711_p8 }
  0x59   : > { %618 = vrot.lane.b32.xlu0 %v622_v30, %s816_s27  ;;  %628 = vrot.lane.b32.xlu1 %v612_v29, %s817_s8 }
  0xc3   : > { %v614_v31 = vpop.permute.xlu0 %613  ;;  %v624_v32 = vpop.permute.xlu1 %623 }
  0xc4   : > { %v616_v33 = vunpack.i.h.bf16 %v614_v31  ;;  %v615_v34 = vunpack.i.l.bf16 %v614_v31  ;;  %v626_v35 = vunpack.i.h.bf16 %v624_v32  ;;  %v625_v36 = vunpack.i.l.bf16 %v624_v32 }
  0xc6   : > { %v297_v43 = vsel %vm293_vm6, %v615_v34, 0.0  ;;  %v312_v44 = vsel %vm311_vm7, %v625_v36, %v626_v35  ;;  %v315_v45 = vsel %vm311_vm7, 0.0, %v625_v36  ;;  %v294_v46 = vsel %vm293_vm6, %v616_v33, %v615_v34 }
  0xcb   : > { %v619_v37 = vpop.permute.xlu0 %618  ;;  %v629_v38 = vpop.permute.xlu1 %628 }
  0xcc   : > { %v621_v39 = vunpack.i.h.bf16 %v619_v37  ;;  %v620_v40 = vunpack.i.l.bf16 %v619_v37  ;;  %v631_v41 = vunpack.i.h.bf16 %v629_v38  ;;  %v630_v42 = vunpack.i.l.bf16 %v629_v38 }
  0xce   : > { %v303_v47 = vsel %vm302_vm8, %v620_v40, %v621_v39  ;;  %v306_v48 = vsel %vm302_vm8, 0.0, %v620_v40  ;;  %v321_v49 = vsel %vm320_vm9, %v631_v41, %v630_v42  ;;  %v323_v50 = vsel %vm320_vm9, %v630_v42, 0.0 }
  0xcf   : > { %v324_v51 = vadd.f32 %v306_v48, %v294_v46  ;;  %v325_v52 = vadd.f32 %v303_v47, %v297_v43  ;;  %v342_v53 = vrot.slane %v323_v50, 7 }
  0xd1   : > { %v326_v54 = vadd.f32 %v324_v51, %v315_v45  ;;  %v327_v55 = vadd.f32 %v325_v52, %v312_v44  ;;  %v343_v56 = vsel %vm266_vm2, %v321_v49, %v342_v53 }
  0xd2   : > { %345 = vst.msk [vmem:[%s230_s25] sm:$0x3] %vm951_vm0, %v343_v56 }
  0xd3   : > { %vm328_vm10 = vcmp.gt.f32.partialorder %v326_v54, 0.0  ;;  %vm329_vm11 = vcmp.gt.f32.partialorder %v327_v55, 0.0 }
  0xd4   : > { %719 = shalt.err (!%p716_p0)
}
  0xd5   : > { %534 = dma.vmem_to_hbm [thread:$0]  (%p919_p5), %s379_s26, 32, %s381_s21, %s352_s28   ;;  %vm818_vm12 = vmmov 1   ;;  %v279_v57 = vld [vmem:[#allocation3] ss:$2 sm:$0x3]  ;;  %v819_v58 = vmov 0  }
  0xd6   : > { %vm331_vm13 = vmxor %vm328_vm10, %vm818_vm12  ;;  %s362_s24 = scalar_lea.hbm %s1038_s2, %s522_s11  ;;  %vm330_vm15 = vcmp.gt.f32.partialorder %v279_v57, 0.5  ;;  %s223_s25 = scalar_lea.vmem [#allocation8], %s518_s9 }
  0xd7   : > { %vm332_vm14 = vmxor %vm329_vm11, %vm818_vm12  ;;  %v333_v61 = vsel %vm331_vm13, 1, %v819_v58  ;;  %s364_s26 = sshll.u32 %s223_s25, 4  ;;  %s366_s21 = sshll.u32 %s362_s24, 4  ;;  %s365_s26 = int_to_ptr.vmem [resolvable:$true] %s364_s26  ;;  %s367_s21 = int_to_ptr.hbm [resolvable:$true] %s366_s21 }
  0xd8   : > { %v334_v59 = vsel %vm332_vm14, 1, %v819_v58  ;;  %s347_s15 = scalar_lea.sflag [#allocation5], %s943_s29  ;;  %s734_s11 = sshra.s32 %s367_s21, 4  ;;  %s735_s11 = int_to_ptr.hbm [resolvable:$true] %s734_s11 }
  0xd9   : > { %v335_v60 = vrot.slane %v334_v59, 7  ;;  %s736_s28 = scalar_lea.hbm %s735_s11, 2  ;;  %s740_s5 = scalar_lea.hbm %s1038_s2, 4 }
  0xda   : > { %p737_p3 = scmp.ne.s32.totalorder %s735_s11, %s736_s28  ;;  %p741_p2 = scmp.lt.s32.totalorder %s735_s11, %s1038_s2 }
  0xdb   : > { %v336_v62 = vsel %vm266_vm2, %v333_v61, %v335_v60  ;;  %p742_p1 = scmp.lt.s32.totalorder %s740_s5, %s736_s28 }
  0xdc   : > { %vm337_vm1 = vcmp.ne.s32.totalorder %v336_v62, 0  ;;  %p738_p7 = pnand %p737_p3, %p919_p5 }
  0xdd   : > { %vm338_vm3 = vmand %vm330_vm15, %vm337_vm1  ;;  %p743_p4 = por %p742_p1, %p741_p2 }
  0xde   : > { %v339_v63 = vsel %vm338_vm3, 1.0, %v813_v2  ;;  %p739_p10 = pneg %p738_p7 }
  0xdf   : > { %340 = vst.msk [vmem:[%s223_s25] sm:$0x3] %vm951_vm0, %v339_v63 }
  0xe0   : > { %p744_p8 = pnand %p743_p4, %p739_p10 }
  0xe2   : > { %747 = shalt.err (!%p744_p8)
}
  0xe3   : > { %533 = dma.vmem_to_hbm [thread:$0]  (%p919_p5), %s365_s26, 32, %s367_s21, %s347_s15  }
  0xe4 PF: > { %s392_s29 = sand.u32 1, %s790_s12   ;;  %p546_p11 = pnand %p511_p9, %p889_p6 }
  0xe5   : > { %s393_s22 = scalar_lea.sflag [#allocation5], %s392_s29 }
  0xe6   : > { %p547_p12 = pneg %p546_p11 }
  0xe8   : > { %781 = dma.done.wait (%p547_p12), %s393_s22, 32  }
  0xe9   : > { %783 = vsyncadd (%p547_p12), %s393_s22, 4294967264  ;;  %s403_s27 = scalar_lea.sflag [#allocation10], %s392_s29 }
  0xea   : > { %785 = dma.done.wait (%p547_p12), %s403_s27, 32  }
  0xeb   : > { %787 = vsyncadd (%p547_p12), %s403_s27, 4294967264  ;;  %s24_s17 = sadd.s32 1, %s810_s17   ;;  %s1049_s12 = smov %s794_s13 }
  0xec   : > { %p21_p13 = scmp.ge.s32.totalorder %s24_s17, 4   ;;  %s1050_s13 = smov %s798_s14 }
  0xed   : > { %s1051_s14 = smov %s928_s10  ;;  %s1052_s15 = smov %s806_s16 }
  0xee   : > { %s1053_s16 = smov %s1055_s30  ;;  %23 = sbr.rel (!%p21_p13) target bundleno = 9 (0x9), region = 104 }
  0xf3   :  { %409 = vsyncpa [#allocation4], 1 }
  0xf4   :  { %411 = vsyncpa [#allocation4 + $0x1], 1 }
  0xf5   :  { %412 = vsyncpa [#allocation7], 1 }
  0xf6   :  { %414 = vsyncpa [#allocation7 + $0x1], 1 }
  0xf7   :  { %415 = vsyncpa [#allocation5], 1 }
  0xf8   :  { %417 = vsyncpa [#allocation5 + $0x1], 1 }
  0xf9   :  { %418 = vsyncpa [#allocation10], 1 }
  0xfa   :  { %420 = vsyncpa [#allocation10 + $0x1], 1 }

</bundles_post_ra>
